<compile_context>
chip_gen: v5e
topology: v5e:2x2
jax: 0.10.0
libtpu: 0.0.40
codegen_flags: <defaults>
</compile_context>

<pallas_src>
import jax
import jax.numpy as jnp
from jax import lax
from jax.experimental import pallas as pl
from jax.experimental.pallas import tpu as pltpu


def linear_kernel(x_ref, w_ref, b_ref, o_ref):
    x = x_ref[...]          # (B, in_features)
    w = w_ref[...]          # (out_features, in_features)  -- PyTorch layout
    b = b_ref[...]          # (1, out_features)
    # Contract x dim 1 with w dim 1: MXU trans-B matmul, no transpose copy.
    y = lax.dot_general(
        x, w,
        dimension_numbers=(((1,), (1,)), ((), ())),
        preferred_element_type=jnp.float32,
    )
    o_ref[...] = (y + b).astype(o_ref.dtype)


def simple_model_forward(x, weight, bias):
    """x: (B, 10) f32, weight: (5, 10) f32, bias: (5,) f32 -> (B, 5) f32."""
    B = x.shape[0]
    out_features = weight.shape[0]
    bias2d = bias.reshape(1, out_features)  # keep refs 2-D for TPU layout

    # Whole-array VMEM blocks, no grid: a single kernel invocation does one
    # MXU pass + a VPU bias add. (If B ever grows to thousands of rows, switch
    # to a batch-tiled grid with a "parallel" axis; unnecessary at this size.)
    return pl.pallas_call(
        linear_kernel,
        out_shape=jax.ShapeDtypeStruct((B, out_features), x.dtype),
        in_specs=[
            pl.BlockSpec(memory_space=pltpu.MemorySpace.VMEM),
            pl.BlockSpec(memory_space=pltpu.MemorySpace.VMEM),
            pl.BlockSpec(memory_space=pltpu.MemorySpace.VMEM),
        ],
        out_specs=pl.BlockSpec(memory_space=pltpu.MemorySpace.VMEM),
    )(x, weight, bias2d)


if __name__ == "__main__":
    key = jax.random.PRNGKey(0)
    k_x, k_w, k_b = jax.random.split(key, 3)

    B, IN, OUT = 4, 10, 5

    # Deterministic parameter init mimicking torch.nn.Linear defaults:
    # uniform(-1/sqrt(in_features), 1/sqrt(in_features))
    bound = 1.0 / (IN ** 0.5)
    weight = jax.random.uniform(k_w, (OUT, IN), jnp.float32, -bound, bound)
    bias = jax.random.uniform(k_b, (OUT,), jnp.float32, -bound, bound)

    x = jax.random.normal(k_x, (B, IN), jnp.float32)

    y = simple_model_forward(x, weight, bias)
    jax.block_until_ready(y)

    # Reference check against plain JAX (same math as torch.nn.Linear).
    y_ref = x @ weight.T + bias
    assert y.shape == (B, OUT)
    assert jnp.allclose(y, y_ref, atol=1e-5, rtol=1e-5)

    print("KERNEL_OK")
</pallas_src>

<mosaic_0001>
module attributes {stable_mosaic.version = 11 : i64} {
  func.func @linear_kernel(%arg0: memref<4x10xf32, #tpu.memory_space<vmem>>, %arg1: memref<5x10xf32, #tpu.memory_space<vmem>>, %arg2: memref<1x5xf32, #tpu.memory_space<vmem>>, %arg3: memref<4x5xf32, #tpu.memory_space<vmem>>) attributes {dimension_semantics = [], scalar_prefetch = 0 : i64, scratch_operands = 0 : i64, tpu.core_type = #tpu.core_type<tc>} {
    %c0 = arith.constant 0 : index
    %c0_0 = arith.constant 0 : index
    %0 = vector.load %arg0[%c0, %c0_0] : memref<4x10xf32, #tpu.memory_space<vmem>>, vector<4x10xf32>
    %c0_1 = arith.constant 0 : index
    %c0_2 = arith.constant 0 : index
    %1 = vector.load %arg1[%c0_1, %c0_2] : memref<5x10xf32, #tpu.memory_space<vmem>>, vector<5x10xf32>
    %c0_3 = arith.constant 0 : index
    %c0_4 = arith.constant 0 : index
    %2 = vector.load %arg2[%c0_3, %c0_4] : memref<1x5xf32, #tpu.memory_space<vmem>>, vector<1x5xf32>
    %cst = arith.constant dense<0.000000e+00> : vector<4x5xf32>
    %3 = tpu.matmul %0, %1, %cst {dimension_numbers = #tpu.dot_dimension_numbers<[1], [1], [0], [0], [0, 0, 1, 0], [], []>} : vector<4x10xf32>, vector<5x10xf32>, vector<4x5xf32> -> vector<4x5xf32>
    %4 = vector.broadcast %2 : vector<1x5xf32> to vector<4x5xf32>
    %5 = arith.addf %3, %4 : vector<4x5xf32>
    %c0_5 = arith.constant 0 : index
    %c0_6 = arith.constant 0 : index
    %6 = vector.load %arg3[%c0_5, %c0_6] : memref<4x5xf32, #tpu.memory_space<vmem>>, vector<4x5xf32>
    tpu.vector_store %arg3[%c0_5, %c0_6], %5 {strides = array<i32>} : memref<4x5xf32, #tpu.memory_space<vmem>>, vector<4x5xf32>,
    return
  }
}

</mosaic_0001>

<bundles_post_ra>
// kernel: tpu_custom_call.1
= control target key start
LH: loop header
LB: loop body
LE: loop exit
PB: predicated region body
PF: predicated region fallthrough
CT: control target
= control target key end

     0   :  { %8 = vsyncpa [#allocation3], 0  ;;  %s215_s0 = inlined_call_operand.hbm [shape: f32[4,10], index: 0, kind: input, shape index: {}]   ;;  %s216_s1 = inlined_call_operand.hbm [shape: f32[5,10], index: 1, kind: input, shape index: {}]   ;;  %s217_s2 = inlined_call_operand.vmem [shape: f32[1,5], index: 2, kind: input, shape index: {}]   ;;  %s218_s3 = inlined_call_operand.hbm [shape: f32[4,5], index: 3, kind: output, shape index: {}]  }
   0x1   :  { %9 = vsyncpa [#allocation6], 0 }
   0x2   :  { %10 = vsyncpa [#allocation4], 0  ;;  %s16_s14 = sshll.u32 %s215_s0, 4  ;;  %s180_s15 = smov [#allocation2]   ;;  %s17_s14 = int_to_ptr.hbm [resolvable:$true] %s16_s14 }
   0x3   :  { %s18_s16 = sshll.u32 %s180_s15, 4  ;;  %s27_s19 = sshll.u32 %s216_s1, 4  ;;  %s19_s16 = int_to_ptr.vmem [resolvable:$true] %s18_s16  ;;  %s28_s19 = int_to_ptr.hbm [resolvable:$true] %s27_s19 }
   0x4   :  { %21 = dma.hbm_to_vmem [thread:$0]  %s17_s14, 64, %s19_s16, [#allocation3]  }
   0x5   :  { %s181_s20 = smov [#allocation5]  }
   0x6   :  { %s29_s21 = sshll.u32 %s181_s20, 4  ;;  %s30_s21 = int_to_ptr.vmem [resolvable:$true] %s29_s21 }
   0x7   :  { %32 = dma.hbm_to_vmem [thread:$0]  %s28_s19, 128, %s30_s21, [#allocation6]  }
   0x8   :  { %174 = dma.done.wait [#allocation3], 64  }
   0x9   :  { %175 = vsyncadd [#allocation3], 4294967232 }
   0xa   :  { %176 = dma.done.wait [#allocation6], 128  }
   0xb   :  { %177 = vsyncadd [#allocation6], 4294967168  ;;  %vm49_vm0 = vcmask 80896   ;;  %v44_v0 = vld [vmem:[#allocation5] sm:$0x1f]  ;;  %s182_s1 = smov [#allocation7]  }
   0xc   :  { %96 = vmatpush.xpose.msk.msra.mxu0 %vm49_vm0, %v44_v0  ;;  %v43_v1 = vld [vmem:[#allocation2] sm:$0xf]  ;;  %s83_s23 = sshll.u32 %s182_s1, 4  ;;  %s85_s26 = sshll.u32 %s218_s3, 4  ;;  %vm76_vm1 = vcmask 35840   ;;  %s84_s23 = int_to_ptr.vmem [resolvable:$true] %s83_s23  ;;  %s86_s26 = int_to_ptr.hbm [resolvable:$true] %s85_s26 }
   0xd   :  { %v101_v2 = vld [vmem:[%s217_s2] ss:$0 sm:$0xff] }
   0xf   :  { %97 = vmatmul.msk.f32.vlgmr.msra.gmra.mxu0 %vm49_vm0, %v43_v1 }
  0x8c   :  { %v73_v3 = vpop.f32.mrf.mxu0 }
  0x8d   :  { %v74_v4 = vadd.f32 %v101_v2, %v73_v3 }
  0x8f   :  { %77 = vst.msk [vmem:[#allocation7] sm:$0xf] %vm76_vm1, %v74_v4 }
  0x90   :  { %88 = dma.vmem_to_hbm [thread:$0]  %s84_s23, 64, %s86_s26, [#allocation4]  }
  0x91   :  { %178 = dma.done.wait [#allocation4], 64  }
  0x92   :  { %179 = vsyncadd [#allocation4], 4294967232 }
  0x93   :  { %93 = vsyncpa [#allocation3], 1 }
  0x94   :  { %94 = vsyncpa [#allocation6], 1 }
  0x95   :  { %95 = vsyncpa [#allocation4], 1 }

</bundles_post_ra>
